<compile_context>
chip_gen: v7x
topology: tpu7x:2x2x1
jax: 0.10.0
libtpu: 0.0.40
codegen_flags: <defaults>
</compile_context>

<pallas_src>
import jax
import jax.numpy as jnp
from jax.experimental import pallas as pl
from jax.experimental.pallas import tpu as pltpu

# ---------------- model hyperparameters (module defaults) ----------------
DIM = 128
BRAND_DIM = 16
CATEGORY_CODE_DIM = 16
OTHER_FEATS = 11
HIDDEN_IN = DIM + DIM + CATEGORY_CODE_DIM + BRAND_DIM + OTHER_FEATS  # 299
H1 = 128
H2 = 32
H3 = 1
N_FEATURES = 31

N_USERS = 50
N_ITEMS = 100
N_BRANDS = 20

EMB_ROWS = N_USERS + N_ITEMS + N_BRANDS           # 170
EMB_PAD = ((EMB_ROWS + 7) // 8) * 8               # 176 (8-aligned sublanes)


# ---------------------------- Pallas kernel ------------------------------
def cbf_kernel(x_ref, w_emb_ref, w_x_ref, b1_ref, w2_ref, b2_ref,
               w3t_ref, b3_ref, o_ref):
    x = x_ref[...]                                     # (TB, 31) f32
    tb = x.shape[0]

    # Multi-hot row selector: one 1 each in the user / item / brand row range
    # of the stacked pre-fused table -> one matmul gives u+i+b layer-1 terms.
    uid = x[:, 0:1].astype(jnp.int32)
    iid = x[:, 1:2].astype(jnp.int32) + N_USERS
    bid = x[:, 19:20].astype(jnp.int32) + (N_USERS + N_ITEMS)
    iota = jax.lax.broadcasted_iota(jnp.int32, (tb, EMB_PAD), 1)
    multihot = ((iota == uid) | (iota == iid) | (iota == bid)).astype(jnp.bfloat16)

    # Layer 1: embedding contribution + raw-feature contribution.
    z1 = jnp.dot(multihot, w_emb_ref[...], preferred_element_type=jnp.float32)
    z1 += jnp.dot(x.astype(jnp.bfloat16), w_x_ref[...],
                  preferred_element_type=jnp.float32)
    z1 = jnp.maximum(z1 + b1_ref[...], 0.0)            # (TB, 128) f32, ReLU

    # Layer 2
    z2 = jnp.dot(z1.astype(jnp.bfloat16), w2_ref[...],
                 preferred_element_type=jnp.float32)
    z2 = jnp.maximum(z2 + b2_ref[...], 0.0)            # (TB, 32) f32, ReLU

    # Layer 3 (32 -> 1): (1,32) contracted against (TB,32) on the last axis of
    # both -> lane-dense (1, TB) output row.
    z3 = jax.lax.dot_general(w3t_ref[...], z2.astype(jnp.bfloat16),
                             (((1,), (1,)), ((), ())),
                             preferred_element_type=jnp.float32)  # (1, TB)
    o_ref[...] = jnp.tanh(z3 + b3_ref[0]).astype(o_ref.dtype)


def ff_pallas(x, w_emb_bf, w_x_bf, b1, w2_bf, b2, w3t_bf, b3, *, tb=256):
    B, F = x.shape
    assert F == N_FEATURES
    # Large tiles when possible; a small batch is a single grid step.
    TB = tb if B >= tb else max(8, ((B + 7) // 8) * 8)
    grid = pl.cdiv(B, TB)
    B_pad = grid * TB
    if B_pad != B:
        x = jnp.pad(x, ((0, B_pad - B), (0, 0)))

    out_row = pl.pallas_call(
        cbf_kernel,
        out_shape=jax.ShapeDtypeStruct((1, B_pad), jnp.float32),
        grid_spec=pltpu.PrefetchScalarGridSpec(
            num_scalar_prefetch=0,
            grid=(grid,),
            in_specs=[
                pl.BlockSpec((TB, N_FEATURES), lambda i: (i, 0)),      # x tile
                pl.BlockSpec((EMB_PAD, H1), lambda i: (0, 0)),         # fused emb@w1
                pl.BlockSpec((N_FEATURES, H1), lambda i: (0, 0)),      # W_x
                pl.BlockSpec((1, H1), lambda i: (0, 0)),               # b1
                pl.BlockSpec((H1, H2), lambda i: (0, 0)),              # w2
                pl.BlockSpec((1, H2), lambda i: (0, 0)),               # b2
                pl.BlockSpec((1, H2), lambda i: (0, 0)),               # w3^T
                pl.BlockSpec(memory_space=pltpu.MemorySpace.SMEM),     # b3
            ],
            out_specs=pl.BlockSpec((1, TB), lambda i: (0, i)),
        ),
        compiler_params=pltpu.CompilerParams(
            dimension_semantics=("parallel",)),
    )(x, w_emb_bf, w_x_bf, b1, w2_bf, b2, w3t_bf, b3)
    return out_row[0, :B][:, None]                      # (B, 1)


# --------------------------- parameter setup ------------------------------
def init_params(key):
    ks = jax.random.split(key, 9)
    return {
        "users_emb": jax.random.normal(ks[0], (N_USERS, DIM), jnp.float32),
        "items_emb": jax.random.normal(ks[1], (N_ITEMS, DIM), jnp.float32),
        "brands_emb": jax.random.normal(ks[2], (N_BRANDS, BRAND_DIM), jnp.float32),
        "w1": jax.random.normal(ks[3], (HIDDEN_IN, H1), jnp.float32) * 0.05,
        "b1": jax.random.normal(ks[4], (1, H1), jnp.float32) * 0.05,
        "w2": jax.random.normal(ks[5], (H1, H2), jnp.float32) * 0.05,
        "b2": jax.random.normal(ks[6], (1, H2), jnp.float32) * 0.05,
        "w3": jax.random.normal(ks[7], (H2, H3), jnp.float32) * 0.05,
        "b3": jax.random.normal(ks[8], (1, H3), jnp.float32) * 0.05,
    }


# ------------------------------ forward -----------------------------------
def content_based_filtering_forward(params, x):
    w1 = params["w1"]                                    # (299, 128)

    # Pre-contract embedding tables with their w1 row slices (tiny f32
    # matmuls on the host side of the jit; done once per call, negligible).
    fused_u = params["users_emb"] @ w1[0:DIM]                      # (50, 128)
    fused_i = params["items_emb"] @ w1[DIM:2 * DIM]                # (100, 128)
    fused_b = params["brands_emb"] @ w1[2 * DIM:2 * DIM + BRAND_DIM]  # (20, 128)
    w_emb = jnp.concatenate([fused_u, fused_i, fused_b], axis=0)   # (170, 128)
    w_emb = jnp.pad(w_emb, ((0, EMB_PAD - EMB_ROWS), (0, 0)))      # (176, 128)

    # Raw-feature weight: zero rows at id / unused columns so x @ W_x gives
    # exactly cat @ w1[272:288] + other @ w1[288:299].
    w_x = jnp.zeros((N_FEATURES, H1), jnp.float32)
    w_x = w_x.at[2:18].set(w1[2 * DIM + BRAND_DIM:
                              2 * DIM + BRAND_DIM + CATEGORY_CODE_DIM])
    w_x = w_x.at[20:31].set(w1[2 * DIM + BRAND_DIM + CATEGORY_CODE_DIM:])

    return ff_pallas(
        x,
        w_emb.astype(jnp.bfloat16),
        w_x.astype(jnp.bfloat16),
        params["b1"],
        params["w2"].astype(jnp.bfloat16),
        params["b2"],
        params["w3"].T.astype(jnp.bfloat16),   # (1, 32)
        params["b3"].reshape(-1),              # (1,) f32 scalar in SMEM
    )


# ----------------------------- reference ----------------------------------
def reference_forward(params, x):
    user_ids = x[:, 0].astype(jnp.int32)
    item_ids = x[:, 1].astype(jnp.int32)
    brand_ids = x[:, 19].astype(jnp.int32)
    h = jnp.concatenate(
        (params["users_emb"][user_ids], params["items_emb"][item_ids],
         params["brands_emb"][brand_ids], x[:, 2:18], x[:, 20:]), axis=1)
    z1 = jax.nn.relu(h @ params["w1"] + params["b1"])
    z2 = jax.nn.relu(z1 @ params["w2"] + params["b2"])
    return jnp.tanh(z2 @ params["w3"] + params["b3"])


# ------------------------------- main --------------------------------------
if __name__ == "__main__":
    key = jax.random.PRNGKey(0)
    pkey, xkey, ukey, ikey, bkey = jax.random.split(key, 5)
    params = init_params(pkey)

    B = 16
    x = jax.random.normal(xkey, (B, N_FEATURES), jnp.float32)
    # id columns stored as floats (like the torch model expects)
    user_ids = jax.random.randint(ukey, (B,), 0, N_USERS).astype(jnp.float32)
    item_ids = jax.random.randint(ikey, (B,), 0, N_ITEMS).astype(jnp.float32)
    brand_ids = jax.random.randint(bkey, (B,), 0, N_BRANDS).astype(jnp.float32)
    x = x.at[:, 0].set(user_ids).at[:, 1].set(item_ids).at[:, 19].set(brand_ids)

    fwd = jax.jit(content_based_filtering_forward)
    out = jax.block_until_ready(fwd(params, x))

    ref = reference_forward(params, x)
    assert out.shape == (B, 1)
    max_err = float(jnp.max(jnp.abs(out - ref)))
    # bf16 matmul operands vs f32 reference -> loose-but-meaningful tolerance
    assert max_err < 3e-2, f"max abs err {max_err}"

    print("KERNEL_OK")
</pallas_src>

<mosaic_0001>
module attributes {stable_mosaic.version = 11 : i64} {
  func.func @cbf_kernel(%arg0: i32, %arg1: memref<16x31xf32, #tpu.memory_space<vmem>>, %arg2: memref<176x128xbf16, #tpu.memory_space<vmem>>, %arg3: memref<31x128xbf16, #tpu.memory_space<vmem>>, %arg4: memref<1x128xf32, #tpu.memory_space<vmem>>, %arg5: memref<128x32xbf16, #tpu.memory_space<vmem>>, %arg6: memref<1x32xf32, #tpu.memory_space<vmem>>, %arg7: memref<1x32xbf16, #tpu.memory_space<vmem>>, %arg8: memref<1xf32, #tpu.memory_space<smem>>, %arg9: memref<1x16xf32, #tpu.memory_space<vmem>>) attributes {dimension_semantics = [#tpu.dimension_semantics<parallel>], iteration_bounds = array<i64: 1>, scalar_prefetch = 0 : i64, scratch_operands = 0 : i64, tpu.core_type = #tpu.core_type<tc>, window_params = [{transform_indices = @transform_0, window_bounds = array<i64: 16, 31>}, {pipeline_mode = #tpu.pipeline_mode<synchronous>, transform_indices = @transform_1, window_bounds = array<i64: 176, 128>}, {pipeline_mode = #tpu.pipeline_mode<synchronous>, transform_indices = @transform_2, window_bounds = array<i64: 31, 128>}, {pipeline_mode = #tpu.pipeline_mode<synchronous>, transform_indices = @transform_3, window_bounds = array<i64: 1, 128>}, {pipeline_mode = #tpu.pipeline_mode<synchronous>, transform_indices = @transform_4, window_bounds = array<i64: 128, 32>}, {pipeline_mode = #tpu.pipeline_mode<synchronous>, transform_indices = @transform_5, window_bounds = array<i64: 1, 32>}, {pipeline_mode = #tpu.pipeline_mode<synchronous>, transform_indices = @transform_6, window_bounds = array<i64: 1, 32>}, {transform_indices = @transform_7, window_bounds = array<i64: 1>}, {transform_indices = @transform_8, window_bounds = array<i64: 1, 16>}]} {
    %c0 = arith.constant 0 : index
    %c0_0 = arith.constant 0 : index
    %0 = vector.load %arg1[%c0, %c0_0] : memref<16x31xf32, #tpu.memory_space<vmem>>, vector<16x31xf32>
    %1 = vector.extract_strided_slice %0 {offsets = [0, 0], sizes = [16, 1], strides = [1, 1]} : vector<16x31xf32> to vector<16x1xf32>
    %2 = arith.fptosi %1 : vector<16x1xf32> to vector<16x1xi32>
    %3 = vector.extract_strided_slice %0 {offsets = [0, 1], sizes = [16, 1], strides = [1, 1]} : vector<16x31xf32> to vector<16x1xf32>
    %4 = arith.fptosi %3 : vector<16x1xf32> to vector<16x1xi32>
    %c50_i32 = arith.constant 50 : i32
    %5 = vector.broadcast %c50_i32 : i32 to vector<16x1xi32>
    %6 = arith.addi %4, %5 : vector<16x1xi32>
    %7 = vector.extract_strided_slice %0 {offsets = [0, 19], sizes = [16, 1], strides = [1, 1]} : vector<16x31xf32> to vector<16x1xf32>
    %8 = arith.fptosi %7 : vector<16x1xf32> to vector<16x1xi32>
    %c150_i32 = arith.constant 150 : i32
    %9 = vector.broadcast %c150_i32 : i32 to vector<16x1xi32>
    %10 = arith.addi %8, %9 : vector<16x1xi32>
    %11 = tpu.iota {dimensions = array<i32: 1>} : vector<16x176xi32>
    %12 = vector.broadcast %2 : vector<16x1xi32> to vector<16x176xi32>
    %13 = arith.cmpi eq, %11, %12 : vector<16x176xi32>
    %14 = vector.broadcast %6 : vector<16x1xi32> to vector<16x176xi32>
    %15 = arith.cmpi eq, %11, %14 : vector<16x176xi32>
    %16 = arith.ori %13, %15 : vector<16x176xi1>
    %17 = vector.broadcast %10 : vector<16x1xi32> to vector<16x176xi32>
    %18 = arith.cmpi eq, %11, %17 : vector<16x176xi32>
    %19 = arith.ori %16, %18 : vector<16x176xi1>
    %20 = arith.extui %19 : vector<16x176xi1> to vector<16x176xi32>
    %21 = arith.sitofp %20 : vector<16x176xi32> to vector<16x176xf32>
    %22 = arith.truncf %21 : vector<16x176xf32> to vector<16x176xbf16>
    %c0_1 = arith.constant 0 : index
    %c0_2 = arith.constant 0 : index
    %23 = vector.load %arg2[%c0_1, %c0_2] : memref<176x128xbf16, #tpu.memory_space<vmem>>, vector<176x128xbf16>
    %cst = arith.constant dense<0.000000e+00> : vector<16x128xf32>
    %24 = tpu.matmul %22, %23, %cst {dimension_numbers = #tpu.dot_dimension_numbers<[1], [0], [0], [1], [0, 0, 1, 1], [], []>} : vector<16x176xbf16>, vector<176x128xbf16>, vector<16x128xf32> -> vector<16x128xf32>
    %25 = arith.truncf %0 : vector<16x31xf32> to vector<16x31xbf16>
    %c0_3 = arith.constant 0 : index
    %c0_4 = arith.constant 0 : index
    %26 = vector.load %arg3[%c0_3, %c0_4] : memref<31x128xbf16, #tpu.memory_space<vmem>>, vector<31x128xbf16>
    %cst_5 = arith.constant dense<0.000000e+00> : vector<16x128xf32>
    %27 = tpu.matmul %25, %26, %cst_5 {dimension_numbers = #tpu.dot_dimension_numbers<[1], [0], [0], [1], [0, 0, 1, 1], [], []>} : vector<16x31xbf16>, vector<31x128xbf16>, vector<16x128xf32> -> vector<16x128xf32>
    %28 = arith.addf %24, %27 : vector<16x128xf32>
    %c0_6 = arith.constant 0 : index
    %c0_7 = arith.constant 0 : index
    %29 = vector.load %arg4[%c0_6, %c0_7] : memref<1x128xf32, #tpu.memory_space<vmem>>, vector<1x128xf32>
    %30 = vector.broadcast %29 : vector<1x128xf32> to vector<16x128xf32>
    %31 = arith.addf %28, %30 : vector<16x128xf32>
    %cst_8 = arith.constant 0.000000e+00 : f32
    %32 = vector.broadcast %cst_8 : f32 to vector<16x128xf32>
    %33 = arith.maximumf %31, %32 : vector<16x128xf32>
    %34 = arith.truncf %33 : vector<16x128xf32> to vector<16x128xbf16>
    %c0_9 = arith.constant 0 : index
    %c0_10 = arith.constant 0 : index
    %35 = vector.load %arg5[%c0_9, %c0_10] : memref<128x32xbf16, #tpu.memory_space<vmem>>, vector<128x32xbf16>
    %cst_11 = arith.constant dense<0.000000e+00> : vector<16x32xf32>
    %36 = tpu.matmul %34, %35, %cst_11 {dimension_numbers = #tpu.dot_dimension_numbers<[1], [0], [0], [1], [0, 0, 1, 1], [], []>} : vector<16x128xbf16>, vector<128x32xbf16>, vector<16x32xf32> -> vector<16x32xf32>
    %c0_12 = arith.constant 0 : index
    %c0_13 = arith.constant 0 : index
    %37 = vector.load %arg6[%c0_12, %c0_13] : memref<1x32xf32, #tpu.memory_space<vmem>>, vector<1x32xf32>
    %38 = vector.broadcast %37 : vector<1x32xf32> to vector<16x32xf32>
    %39 = arith.addf %36, %38 : vector<16x32xf32>
    %cst_14 = arith.constant 0.000000e+00 : f32
    %40 = vector.broadcast %cst_14 : f32 to vector<16x32xf32>
    %41 = arith.maximumf %39, %40 : vector<16x32xf32>
    %c0_15 = arith.constant 0 : index
    %c0_16 = arith.constant 0 : index
    %42 = vector.load %arg7[%c0_15, %c0_16] : memref<1x32xbf16, #tpu.memory_space<vmem>>, vector<1x32xbf16>
    %43 = arith.truncf %41 : vector<16x32xf32> to vector<16x32xbf16>
    %cst_17 = arith.constant dense<0.000000e+00> : vector<1x16xf32>
    %44 = tpu.matmul %42, %43, %cst_17 {dimension_numbers = #tpu.dot_dimension_numbers<[1], [1], [0], [0], [0, 0, 1, 0], [], []>} : vector<1x32xbf16>, vector<16x32xbf16>, vector<1x16xf32> -> vector<1x16xf32>
    %c0_18 = arith.constant 0 : index
    %45 = memref.load %arg8[%c0_18] : memref<1xf32, #tpu.memory_space<smem>>
    %46 = vector.broadcast %45 : f32 to vector<1x16xf32>
    %47 = arith.addf %44, %46 : vector<1x16xf32>
    %48 = math.tanh %47 : vector<1x16xf32>
    %c0_19 = arith.constant 0 : index
    %c0_20 = arith.constant 0 : index
    %49 = vector.load %arg9[%c0_19, %c0_20] : memref<1x16xf32, #tpu.memory_space<vmem>>, vector<1x16xf32>
    tpu.vector_store %arg9[%c0_19, %c0_20], %48 {strides = array<i32>} : memref<1x16xf32, #tpu.memory_space<vmem>>, vector<1x16xf32>,
    return
  }
  func.func @transform_0(%arg0: i32) -> (i32, i32) {
    %c0_i32 = arith.constant 0 : i32
    %c0_i32_0 = arith.constant 0 : i32
    return %arg0, %c0_i32 : i32, i32
  }
  func.func @transform_1(%arg0: i32) -> (i32, i32) {
    %c0_i32 = arith.constant 0 : i32
    %c0_i32_0 = arith.constant 0 : i32
    %c0_i32_1 = arith.constant 0 : i32
    return %c0_i32, %c0_i32_0 : i32, i32
  }
  func.func @transform_2(%arg0: i32) -> (i32, i32) {
    %c0_i32 = arith.constant 0 : i32
    %c0_i32_0 = arith.constant 0 : i32
    %c0_i32_1 = arith.constant 0 : i32
    return %c0_i32, %c0_i32_0 : i32, i32
  }
  func.func @transform_3(%arg0: i32) -> (i32, i32) {
    %c0_i32 = arith.constant 0 : i32
    %c0_i32_0 = arith.constant 0 : i32
    %c0_i32_1 = arith.constant 0 : i32
    return %c0_i32, %c0_i32_0 : i32, i32
  }
  func.func @transform_4(%arg0: i32) -> (i32, i32) {
    %c0_i32 = arith.constant 0 : i32
    %c0_i32_0 = arith.constant 0 : i32
    %c0_i32_1 = arith.constant 0 : i32
    return %c0_i32, %c0_i32_0 : i32, i32
  }
  func.func @transform_5(%arg0: i32) -> (i32, i32) {
    %c0_i32 = arith.constant 0 : i32
    %c0_i32_0 = arith.constant 0 : i32
    %c0_i32_1 = arith.constant 0 : i32
    return %c0_i32, %c0_i32_0 : i32, i32
  }
  func.func @transform_6(%arg0: i32) -> (i32, i32) {
    %c0_i32 = arith.constant 0 : i32
    %c0_i32_0 = arith.constant 0 : i32
    %c0_i32_1 = arith.constant 0 : i32
    return %c0_i32, %c0_i32_0 : i32, i32
  }
  func.func @transform_7(%arg0: i32) -> i32 {
    %c0_i32 = arith.constant 0 : i32
    %c0_i32_0 = arith.constant 0 : i32
    return %c0_i32 : i32
  }
  func.func @transform_8(%arg0: i32) -> (i32, i32) {
    %c0_i32 = arith.constant 0 : i32
    %c0_i32_0 = arith.constant 0 : i32
    return %c0_i32, %arg0 : i32, i32
  }
}

</mosaic_0001>

<bundles_post_ra>
// kernel: content_based_filtering_forward.1
= control target key start
LH: loop header
LB: loop body
LE: loop exit
PB: predicated region body
PF: predicated region fallthrough
CT: control target
= control target key end

     0   :  { %v629_v3 = vmov 0   ;;  %v630_v5 = vmov 1   ;;  %v631_v17 = vmov 0.0   ;;  %vm133_vm0 = vcmask 1046528   ;;  %s806_s0 = inlined_call_operand.vmem [shape: f32[16,31], index: 0, kind: input, shape index: {}]   ;;  %s807_s1 = inlined_call_operand.vmem [shape: bf16[176,128], index: 1, kind: input, shape index: {}]   ;;  %s808_s2 = inlined_call_operand.vmem [shape: bf16[31,128], index: 2, kind: input, shape index: {}]   ;;  %s809_s3 = inlined_call_operand.vmem [shape: f32[1,128], index: 3, kind: input, shape index: {}]   ;;  %s810_s4 = inlined_call_operand.vmem [shape: bf16[128,32], index: 4, kind: input, shape index: {}]   ;;  %s811_s5 = inlined_call_operand.vmem [shape: f32[1,32], index: 5, kind: input, shape index: {}]   ;;  %s812_s6 = inlined_call_operand.vmem [shape: bf16[1,32], index: 6, kind: input, shape index: {}]   ;;  %s813_s7 = inlined_call_operand.<no memory space> [shape: f32[1], index: 7, kind: input, shape index: {}]   ;;  %s814_s8 = inlined_call_operand.hbm [shape: f32[1,16], index: 8, kind: output, shape index: {}]  }
   0x1   :  { %v32_v0 = vld [vmem:[%s806_s0] sm:$0xff]  ;;  %v33_v1 = vld [vmem:[%s806_s0 + $0x8] sm:$0xff]  ;;  %578 = vset.pattern.permute.xlu0 %v629_v3  ;;  %579 = vset.pattern.permute.xlu1 %v630_v5  ;;  %v584_v12 = vld [vmem:[%s807_s1 + $0x10] sm:$0xff]   ;;  %v632_v18 = vmov 19   ;;  %vm134_vm1 = vcmask 1047552   ;;  %v633_v20 = vmov 65535  }
   0x2   :  { %v582_v2 = vld [vmem:[%s807_s1] sm:$0xff]   ;;  %v566_v4 = vtrunc.f32 %v32_v0  ;;  %v568_v6 = vtrunc.f32 %v33_v1  ;;  %251 = vmatprep.subr.bf16.mxu1 %v629_v3  ;;  %v583_v9 = vld [vmem:[%s807_s1 + $0x8] sm:$0xff]   ;;  %v585_v13 = vld [vmem:[%s807_s1 + $0x18] sm:$0xff]   ;;  %532 = vmatprep.subr.bf16.mxu0 %v631_v17  ;;  %v135_v21 = vsel %vm133_vm0, 4294967295, %v633_v20  ;;  %v113_v25 = vpack.c.bf16 %v33_v1, %v32_v0 }
   0x3   :  { %252 = vmatpush1.bf16.msra.mxu1 %v582_v2  ;;  %v591_v16 = vld [vmem:[%s808_s2] sm:$0xff]   ;;  %v593_v19 = vld [vmem:[%s808_s2 + $0x8] sm:$0xff]   ;;  %v136_v23 = vsel %vm134_vm1, %v135_v21, 0  ;;  %vm815_vm2 = vmmov 0   ;;  %vm129_vm3 = vcmask 252928  }
   0x4   :  { %v567_v7 = vcvt.f32.s32 %v566_v4  ;;  %v569_v8 = vcvt.f32.s32 %v568_v6  ;;  %253 = vmatprep.subr.bf16.mxu1 %v629_v3  ;;  %533 = vmatpush3.bf16.msra.mxu0 %v591_v16  ;;  %v586_v22 = vld [vmem:[%s807_s1 + $0x20] sm:$0xff]   ;;  %v138_v24 = vand.u32 %v593_v19, %v136_v23  ;;  %v587_v26 = vld [vmem:[%s807_s1 + $0x28] sm:$0xff]  }
   0x5   :  { %534 = vmatprep.subr.bf16.mxu0 %v631_v17  ;;  %536 = vmatprep.mubr.msk.bf16.mxu0 %vm815_vm2, %v631_v17 }
   0x6   :  { %44 = vperm.xlu0 %578, %v567_v7   ;;  %v36_v10 = vadd.s32 50, %v567_v7  ;;  %v37_v11 = vadd.s32 50, %v569_v8  ;;  %v38_v14 = vadd.s32 150, %v567_v7  ;;  %v39_v15 = vadd.s32 150, %v569_v8 }
   0x7   :  { %254 = vmatpush1.bf16.msra.mxu1 %v583_v9 }
   0x8   :  { %54 = vperm.xlu1 %579, %v36_v10   ;;  %255 = vmatprep.subr.bf16.mxu1 %v629_v3 }
   0x9   :  { %535 = vmatpush3.bf16.msra.mxu0 %v138_v24 }
   0xa   :  { %47 = vperm.xlu0 %578, %v569_v8   ;;  %540 = vmatprep.subr.bf16.mxu0 %v631_v17 }
   0xb   :  { %256 = vmatpush1.bf16.msra.mxu1 %v584_v12 }
   0xc   :  { %57 = vperm.xlu1 %579, %v37_v11   ;;  %257 = vmatprep.subr.bf16.mxu1 %v629_v3 }
   0xd   :  { %537 = vmatmul.mubr.msk.bf16.vlgmr.msra.gmra.mrb[0].mxu0 %vm129_vm3, %v113_v25 }
   0xe   :  { %580 = vset.pattern.permute.xlu0 %v632_v18  ;;  %556 = vmatprep.mubr.msk.bf16.mxu0 %vm815_vm2, %v631_v17 }
   0xf   :  { %68 = vperm.xlu0 %580, %v38_v14   ;;  %258 = vmatpush1.bf16.msra.mxu1 %v585_v13 }
  0x10   :  { %581 = vset.pattern.permute.xlu1 %v632_v18  ;;  %259 = vmatprep.subr.bf16.mxu1 %v629_v3 }
  0x11   :  { %71 = vperm.xlu1 %581, %v39_v15  }
  0x13   :  { %260 = vmatpush1.bf16.msra.mxu1 %v586_v22 }
  0x14   :  { %261 = vmatprep.subr.bf16.mxu1 %v629_v3 }
  0x15   :  { %14 = vsyncpa [#allocation4], 0  ;;  %v588_v27 = vld [vmem:[%s807_s1 + $0x30] sm:$0xff]   ;;  %v595_v28 = vld [vmem:[%s810_s4] sm:$0xff]   ;;  %v40_v37 = vlaneseq  ;;  %v635_v49 = vmov 1.0|1.0  }
  0x16   :  { %541 = vmatpush3.bf16.msra.mxu0 %v595_v28  ;;  %v596_v29 = vld [vmem:[%s810_s4 + $0x8] sm:$0xff]   ;;  %v589_v30 = vld [vmem:[%s807_s1 + $0x38] sm:$0xff]   ;;  %v597_v31 = vld [vmem:[%s810_s4 + $0x10] sm:$0xff]  }
  0x17   :  { %262 = vmatpush1.bf16.msra.mxu1 %v587_v26  ;;  %542 = vmatprep.subr.bf16.mxu0 %v631_v17  ;;  %v590_v32 = vld [vmem:[%s807_s1 + $0x40] sm:$0xff]   ;;  %v598_v33 = vld [vmem:[%s810_s4 + $0x18] sm:$0xff]   ;;  %v592_v34 = vld [vmem:[%s807_s1 + $0x48] sm:$0xff]   ;;  %v41_v38 = vand.u32 127, %v40_v37 }
  0x18   :  { %263 = vmatprep.subr.bf16.mxu1 %v629_v3  ;;  %v599_v35 = vld [vmem:[%s810_s4 + $0x20] sm:$0xff]   ;;  %v594_v36 = vld [vmem:[%s807_s1 + $0x50] sm:$0xff]   ;;  %v600_v52 = vld [vmem:[%s810_s4 + $0x28] sm:$0xff]  }
  0x19   :  { %v42_v41 = vadd.s32 128, %v41_v38  ;;  %v601_v55 = vld [vmem:[%s810_s4 + $0x30] sm:$0xff]   ;;  %v602_v56 = vld [vmem:[%s810_s4 + $0x38] sm:$0xff]   ;;  %v507_v58 = vld [vmem:[%s809_s3] ss:$0 sm:$0xff] }
  0x1a   :  { %543 = vmatpush3.bf16.msra.mxu0 %v596_v29  ;;  %v508_v5 = vld [vmem:[%s811_s5] ss:$0 sm:$0xff]  ;;  %s636_s5 = smov [#allocation3]  }
  0x1b   :  { %264 = vmatpush1.bf16.msra.mxu1 %v588_v27  ;;  %544 = vmatprep.subr.bf16.mxu0 %v631_v17  ;;  %v418_v16 = vld [vmem:[%s812_s6] sm:$0x1]  ;;  %s478_s30 = sshll.u32 %s636_s5, 4  ;;  %s479_s30 = int_to_ptr.vmem [resolvable:$true] %s478_s30 }
  0x1c   :  { %265 = vmatprep.subr.bf16.mxu1 %v629_v3  ;;  %s605_s9 = scalar_lea.vmem %s479_s30, 16  ;;  %s609_s6 = scalar_lea.vmem %s479_s30, 32 }
  0x1d   :  { %p606_p0 = scmp.ne.s32.totalorder %s479_s30, %s605_s9  ;;  %p610_p1 = scmp.lt.s32.totalorder %s479_s30, %s479_s30 }
  0x1e   :  { %545 = vmatpush3.bf16.msra.mxu0 %v597_v31  ;;  %p611_p2 = scmp.lt.s32.totalorder %s609_s6, %s605_s9 }
  0x1f   :  { %266 = vmatpush1.bf16.msra.mxu1 %v589_v30  ;;  %546 = vmatprep.subr.bf16.mxu0 %v631_v17 }
  0x20   :  { %267 = vmatprep.subr.bf16.mxu1 %v629_v3  ;;  %p612_p3 = por %p611_p2, %p610_p1 }
  0x22   :  { %547 = vmatpush3.bf16.msra.mxu0 %v598_v33  ;;  %p613_p4 = pnand %p612_p3, %p606_p0 }
  0x23   :  { %268 = vmatpush1.bf16.msra.mxu1 %v590_v32  ;;  %548 = vmatprep.subr.bf16.mxu0 %v631_v17 }
  0x24   :  { %269 = vmatprep.subr.bf16.mxu1 %v629_v3 }
  0x26   :  { %549 = vmatpush3.bf16.msra.mxu0 %v599_v35 }
  0x27   :  { %270 = vmatpush1.bf16.msra.mxu1 %v592_v34  ;;  %550 = vmatprep.subr.bf16.mxu0 %v631_v17 }
  0x28   :  { %271 = vmatprep.subr.bf16.mxu1 %v629_v3 }
  0x2a   :  { %551 = vmatpush3.bf16.msra.mxu0 %v600_v52 }
  0x2b   :  { %272 = vmatpush1.bf16.msra.mxu1 %v594_v36  ;;  %552 = vmatprep.subr.bf16.mxu0 %v631_v17 }
  0x2e   :  { %553 = vmatpush3.bf16.msra.mxu0 %v601_v55 }
  0x2f   :  { %554 = vmatprep.subr.bf16.mxu0 %v631_v17 }
  0x32   :  { %555 = vmatpush3.bf16.msra.mxu0 %v602_v56 }
  0x33   :  { %560 = vmatprep.subr.bf16.mxu0 %v631_v17 }
  0x85   :  { %v45_v39 = vpop.permute.xlu0 %44 }
  0x86   :  { %vm50_vm4 = vcmp.eq.s32.totalorder %v42_v41, %v45_v39  ;;  %vm49_vm0 = vcmp.eq.s32.totalorder %v41_v38, %v45_v39 }
  0x87   :  { %v55_v40 = vpop.permute.xlu1 %54 }
  0x88   :  { %vm60_vm5 = vcmp.eq.s32.totalorder %v42_v41, %v55_v40  ;;  %vm59_vm1 = vcmp.eq.s32.totalorder %v41_v38, %v55_v40 }
  0x89   :  { %v48_v42 = vpop.permute.xlu0 %47  ;;  %vm64_vm9 = vmor %vm50_vm4, %vm60_vm5 }
  0x8a   :  { %vm51_vm7 = vcmp.eq.s32.totalorder %v41_v38, %v48_v42  ;;  %vm52_vm12 = vcmp.eq.s32.totalorder %v42_v41, %v48_v42 }
  0x8b   :  { %v58_v43 = vpop.permute.xlu1 %57 }
  0x8c   :  { %vm61_vm6 = vcmp.eq.s32.totalorder %v41_v38, %v58_v43  ;;  %vm62_vm8 = vcmp.eq.s32.totalorder %v42_v41, %v58_v43 }
  0x8d   :  { %vm65_vm11 = vmor %vm51_vm7, %vm61_vm6  ;;  %vm247_vm6 = vcmask 392192  }
  0x8e   :  { %v69_v44 = vpop.permute.xlu0 %68  ;;  %vm66_vm3 = vmor %vm52_vm12, %vm62_vm8  ;;  %vm422_vm8 = vcmask 261120  }
  0x8f   :  { %vm74_vm10 = vcmp.eq.s32.totalorder %v42_v41, %v69_v44  ;;  %vm73_vm2 = vcmp.eq.s32.totalorder %v41_v38, %v69_v44  ;;  %vm63_vm7 = vmor %vm49_vm0, %vm59_vm1 }
  0x90   :  { %v72_v45 = vpop.permute.xlu1 %71  ;;  %vm78_vm13 = vmor %vm64_vm9, %vm74_vm10 }
  0x91   :  { %vm75_vm14 = vcmp.eq.s32.totalorder %v41_v38, %v72_v45  ;;  %vm76_vm15 = vcmp.eq.s32.totalorder %v42_v41, %v72_v45  ;;  %v487_v46 = vsel %vm78_vm13, 1.0, %v631_v17  ;;  %vm77_vm9 = vmor %vm63_vm7, %vm73_vm2  ;;  %vm816_vm2 = vmmov 0  }
  0x92   :  { %vm80_vm4 = vmor %vm66_vm3, %vm76_vm15 }
  0x93   :  { %vm79_vm5 = vmor %vm65_vm11, %vm75_vm14  ;;  %v489_v47 = vsel %vm80_vm4, 1.0, %v631_v17  ;;  %vm470_vm11 = vcmask 122880  }
  0x94   :  { %v90_v48 = vpack.c.bf16 %v489_v47, %v487_v46  ;;  %vm505_vm10 = vmpackc.low %vm79_vm5, %vm77_vm9 }
  0x96   :  { %504 = vmatprep.mubr.msk.bf16.mxu1 %vm247_vm6, %v90_v48 }
  0x97   :  { %506 = vmatmul.mubr.msk.bf16.vlgmr.msra.gmra.mrb[0].mxu1 %vm505_vm10, %v635_v49 }
  0xe0   :  { %v174_v50 = vpop.f32.mrb[0].mxu0 }
  0xe1   :  { %v538_v51 = vpop.f32.mrb[1].mxu0 }
  0xe2   :  { %v177_v53 = vpop.f32.mrb[2].mxu0 }
  0xe3   :  { %v539_v54 = vpop.f32.mrb[3].mxu0 }
 0x16a   :  { %v285_v57 = vpop.f32.mrb[0].mxu1 }
 0x16b   :  { %v286_v59 = vadd.f32 %v285_v57, %v174_v50  ;;  %v287_v60 = vpop.f32.mrb[1].mxu1 }
 0x16c   :  { %v288_v61 = vpop.f32.mrb[2].mxu1 }
 0x16d   :  { %v299_v62 = vadd.f32 %v507_v58, %v286_v59  ;;  %v289_v63 = vadd.f32 %v288_v61, %v177_v53  ;;  %v290_v0 = vpop.f32.mrb[3].mxu1 }
 0x16f   :  { %v300_v1 = vadd.f32 %v507_v58, %v289_v63  ;;  %v301_v2 = vmax.f32 %v299_v62, 0.0 }
 0x171   :  { %v302_v3 = vmax.f32 %v300_v1, 0.0 }
 0x173   :  { %v303_v4 = vpack.c.bf16 %v302_v3, %v301_v2 }
 0x175   :  { %557 = vmatmul.mubr.bf16.vlgmr.msra.gmra.mrb[4].mxu0 %v303_v4 }
 0x176   :  { %562 = vmatprep.mubr.msk.bf16.mxu0 %vm816_vm2, %v631_v17  ;;  %v421_v17 = vstv %s813_s7 }
 0x248   :  { %v409_v6 = vpop.f32.mrb[4].mxu0 }
 0x249   :  { %v410_v7 = vadd.f32 %v508_v5, %v409_v6  ;;  %v558_v8 = vpop.f32.mrb[5].mxu0 }
 0x24a   :  { %v412_v9 = vpop.f32.mrb[6].mxu0 }
 0x24b   :  { %v413_v10 = vadd.f32 %v508_v5, %v412_v9  ;;  %v559_v11 = vpop.f32.mrb[7].mxu0  ;;  %v416_v12 = vmax.f32 %v410_v7, 0.0 }
 0x24d   :  { %v417_v13 = vmax.f32 %v413_v10, 0.0 }
 0x24f   :  { %v419_v14 = vpack.c.bf16 %v417_v13, %v416_v12 }
 0x251   :  { %v427_v15 = vsel %vm422_vm8, %v419_v14, 0 }
 0x252   :  { %561 = vmatpush3.bf16.xpose.msra.mxu0 %v427_v15 }
 0x259   :  { %563 = vmatmul.mubr.msk.bf16.vlgmr.msra.gmra.mrb[8].mxu0 %vm422_vm8, %v418_v16 }
 0x32c   :  { %v463_v18 = vpop.f32.mrb[8].mxu0 }
 0x32d   :  { %v464_v19 = vadd.f32 %v463_v18, %v421_v17  ;;  %v564_v20 = vpop.f32.mrb[9].mxu0 }
 0x32e   :  { %v466_v21 = vpop.f32.mrb[10].mxu0 }
 0x32f   :  { %603 = vtanh.f32 %v464_v19  ;;  %v565_v22 = vpop.f32.mrb[11].mxu0 }
 0x339   :  { %v604_v23 = vpop.eup %603 }
 0x33a   :  { %471 = vst.msk [vmem:[#allocation3] sm:$0x1] %vm470_vm11, %v604_v23 }
 0x33b   :  { %616 = shalt.err (!%p613_p4)
}
 0x33c   :  { %s617_s11 = scalar_lea.hbm %s814_s8, 16 }
 0x33d   :  { %p618_p5 = scmp.ne.s32.totalorder %s814_s8, %s617_s11  ;;  %p621_p6 = scmp.lt.u32.totalorder %s617_s11, %s814_s8 }
 0x33f   :  { %p623_p7 = pnand %p621_p6, %p618_p5 }
 0x341   :  { %626 = shalt.err (!%p623_p7)
}
 0x342   :  { %481 = dma.vmem_to_hbm [thread:$0]  %s479_s30, 16, %s814_s8, [#allocation4]  }
 0x343   :  { %627 = dma.done.wait [#allocation4], 16  }
 0x344   :  { %628 = vsyncadd [#allocation4], 4294967280 }
 0x345   :  { %485 = vsyncpa [#allocation4], 1 }

</bundles_post_ra>
